<compile_context>
chip_gen: v7x
topology: tpu7x:2x2x1
jax: 0.10.0
libtpu: 0.0.40
codegen_flags: <defaults>
</compile_context>

<pallas_src>
import jax
import jax.numpy as jnp
from jax.experimental import pallas as pl
from jax.experimental.pallas import tpu as pltpu

_MiB = 1 << 20
_LANE = 128
_SMALL_BYPASS_BYTES = 1 * _MiB   # below this, launch overhead dominates -> return x
_MIN_SPLIT_BYTES = 2 * _MiB      # above this, force >= 2 grid steps (v7x megacore)


def _detect_vmem_bytes() -> int:
    """Per-core VMEM capacity; conservative 64 MiB (v7x) fallback."""
    try:
        info = pltpu.get_tpu_info()
        vmem = int(getattr(info, "vmem_capacity_bytes", 0))
        if vmem >= 16 * _MiB:
            return vmem
    except Exception:
        pass
    return 64 * _MiB


_VMEM_BYTES = _detect_vmem_bytes()
# Input + output tiles are each double-buffered by the pipeline, so peak
# resident VMEM ~= 4 * tile.  -> 8 MiB tiles on v7x (64 MiB/TC), 16 MiB on
# v5e/v6e (128 MiB), with the compiler limit sized from the actual working set.
_TARGET_TILE_BYTES = min(16 * _MiB, max(4 * _MiB, _VMEM_BYTES // 8))
_VMEM_LIMIT_BYTES = int(min(_VMEM_BYTES - 8 * _MiB, 4 * _TARGET_TILE_BYTES + 8 * _MiB))


def _sublane_multiple(dtype) -> int:
    # Native sublane packing: 8 rows for 32-bit, 16 for 16-bit, 32 for 8-bit.
    itemsize = jnp.dtype(dtype).itemsize
    return max(8, 32 // max(1, itemsize))


def _round_up(x: int, m: int) -> int:
    return ((x + m - 1) // m) * m


def _round_down(x: int, m: int) -> int:
    return (x // m) * m


def _field_encoder_kernel(x_ref, o_ref):
    # Identity field-encoding of the current tile (no concrete math is
    # specified by the abstract module).
    o_ref[...] = x_ref[...]


def field_encoder_forward(x: jax.Array, *, force_kernel: bool = False) -> jax.Array:
    """Pallas implementation of FieldEncoder.forward (identity contract).

    Accepts any rank.  Degenerate and tiny inputs return `x` directly unless
    `force_kernel=True` (the identity contract does not require a fresh
    buffer); larger inputs are copied with a bandwidth-optimal tiled kernel.
    """
    total = int(x.size)
    itemsize = jnp.dtype(x.dtype).itemsize
    total_bytes = total * itemsize

    # Identity contract: nothing to do for scalars / empty arrays, and tiny
    # inputs are dominated by kernel dispatch cost -> return x as-is.
    if x.ndim == 0 or total == 0:
        return x
    if not force_kernel and total_bytes < _SMALL_BYPASS_BYTES:
        return x

    orig_shape = x.shape
    sub = _sublane_multiple(x.dtype)

    if total % _LANE == 0:
        # Preferred path: values are copied verbatim, so flatten to a
        # lane/sublane-dense (R, 128) slab regardless of the logical shape
        # (free layout plumbing -> unmasked full-width stores even for
        # narrow / odd feature dims and for 1-D inputs).
        R = total // _LANE
        x2 = x.reshape(R, _LANE)
        row_bytes = _LANE * itemsize
        if R <= sub:
            tn = R  # block == full dim: always legal
        else:
            rows_budget = max(sub, _round_down(_TARGET_TILE_BYTES // row_bytes, sub))
            n_tiles = pl.cdiv(total_bytes, _TARGET_TILE_BYTES)
            if total_bytes >= _MIN_SPLIT_BYTES:
                n_tiles = max(n_tiles, 2)  # keep both v7x TensorCores busy
            tn = _round_up(pl.cdiv(R, n_tiles), sub)
            tn = min(tn, rows_budget, _round_down(R, sub))
        grid = (pl.cdiv(R, tn),)
        in_specs = [pl.BlockSpec((tn, _LANE), lambda i: (i, 0))]
        out_specs = pl.BlockSpec((tn, _LANE), lambda i: (i, 0))
        dim_sem = ("parallel",)
        out_2d_shape = (R, _LANE)
    else:
        # Fallback: element count not a multiple of 128 (small / odd inputs).
        # Keep the logical trailing dim; blocks equal the full array extent in
        # any non-aligned axis, so they stay legal.
        x2 = x.reshape(1, -1) if x.ndim == 1 else x.reshape(-1, orig_shape[-1])
        n, d = x2.shape
        row_bytes = d * itemsize
        if row_bytes * min(n, sub) <= _TARGET_TILE_BYTES:
            # Tile rows only; full feature width per block.
            tn = max(sub, _round_down(_TARGET_TILE_BYTES // max(1, row_bytes), sub))
            if total_bytes >= _MIN_SPLIT_BYTES and n > 2 * sub:
                tn = min(tn, _round_up(pl.cdiv(n, 2), sub))  # >= 2 steps for v7x
            if tn >= n:
                tn = n  # block == full dim: always legal
            grid = (pl.cdiv(n, tn),)
            in_specs = [pl.BlockSpec((tn, d), lambda i: (i, 0))]
            out_specs = pl.BlockSpec((tn, d), lambda i: (i, 0))
            dim_sem = ("parallel",)
        else:
            # A handful of rows, each wider than the tile budget: tile the
            # feature dim too, lane-dense, sized from the ACTUAL tn.
            tn = n if n < sub else sub
            td = _round_down(_TARGET_TILE_BYTES // (tn * itemsize), _LANE)
            td = max(_LANE, min(td, _round_down(d, _LANE)))
            grid = (pl.cdiv(n, tn), pl.cdiv(d, td))
            in_specs = [pl.BlockSpec((tn, td), lambda i, j: (i, j))]
            out_specs = pl.BlockSpec((tn, td), lambda i, j: (i, j))
            dim_sem = ("parallel", "parallel")
        out_2d_shape = (n, d)

    y2 = pl.pallas_call(
        _field_encoder_kernel,
        out_shape=jax.ShapeDtypeStruct(out_2d_shape, x2.dtype),
        grid=grid,
        in_specs=in_specs,
        out_specs=out_specs,
        compiler_params=pltpu.CompilerParams(
            dimension_semantics=dim_sem,
            vmem_limit_bytes=_VMEM_LIMIT_BYTES,
        ),
    )(x2)
    return y2.reshape(orig_shape)


if __name__ == "__main__":
    key = jax.random.PRNGKey(0)
    k1, k2, k3, k4 = jax.random.split(key, 4)

    # Small "field" input: 16 instances x 256-dim feature vectors.  Force the
    # Pallas kernel (the default path would return x directly at this size).
    x_small = jax.random.normal(k1, (16, 256), dtype=jnp.float32)
    y_small = jax.block_until_ready(field_encoder_forward(x_small, force_kernel=True))
    assert y_small.shape == x_small.shape and y_small.dtype == x_small.dtype
    assert bool(jnp.array_equal(y_small, x_small)), "identity field encoding mismatch"

    # Default path on the same small input: identity without a copy.
    y_bypass = jax.block_until_ready(field_encoder_forward(x_small))
    assert bool(jnp.array_equal(y_bypass, x_small))

    # Odd, non-128-multiple shape exercises the logical-layout fallback.
    x_odd = jax.random.normal(k2, (7, 100), dtype=jnp.float32)
    y_odd = jax.block_until_ready(field_encoder_forward(x_odd, force_kernel=True))
    assert y_odd.shape == x_odd.shape and y_odd.dtype == x_odd.dtype
    assert bool(jnp.array_equal(y_odd, x_odd))

    # 1-D bf16 input goes through the flattened lane/sublane-dense slab path.
    x_1d = jax.random.normal(k3, (4096,), dtype=jnp.bfloat16)
    y_1d = jax.block_until_ready(field_encoder_forward(x_1d, force_kernel=True))
    assert y_1d.shape == x_1d.shape and y_1d.dtype == x_1d.dtype
    assert bool(jnp.array_equal(y_1d, x_1d))

    # Multi-tile input (>= 2 grid steps so both v7x TensorCores get work).
    x_big = jax.random.normal(k4, (768, 1024), dtype=jnp.float32)
    y_big = jax.block_until_ready(field_encoder_forward(x_big))
    assert y_big.shape == x_big.shape and y_big.dtype == x_big.dtype
    assert bool(jnp.array_equal(y_big, x_big))

    print("KERNEL_OK")
</pallas_src>

<mosaic_0001>
module attributes {stable_mosaic.version = 11 : i64} {
  func.func @_field_encoder_kernel(%arg0: i32, %arg1: memref<32x128xf32, #tpu.memory_space<vmem>>, %arg2: memref<32x128xf32, #tpu.memory_space<vmem>>) attributes {dimension_semantics = [#tpu.dimension_semantics<parallel>], iteration_bounds = array<i64: 1>, scalar_prefetch = 0 : i64, scratch_operands = 0 : i64, tpu.core_type = #tpu.core_type<tc>, window_params = [{transform_indices = @transform_0, window_bounds = array<i64: 32, 128>}, {transform_indices = @transform_1, window_bounds = array<i64: 32, 128>}]} {
    %c0 = arith.constant 0 : index
    %c0_0 = arith.constant 0 : index
    %0 = vector.load %arg1[%c0, %c0_0] : memref<32x128xf32, #tpu.memory_space<vmem>>, vector<32x128xf32>
    %c0_1 = arith.constant 0 : index
    %c0_2 = arith.constant 0 : index
    %1 = vector.load %arg2[%c0_1, %c0_2] : memref<32x128xf32, #tpu.memory_space<vmem>>, vector<32x128xf32>
    tpu.vector_store %arg2[%c0_1, %c0_2], %0 {strides = array<i32>} : memref<32x128xf32, #tpu.memory_space<vmem>>, vector<32x128xf32>,
    return
  }
  func.func @transform_0(%arg0: i32) -> (i32, i32) {
    %c0_i32 = arith.constant 0 : i32
    %c0_i32_0 = arith.constant 0 : i32
    return %arg0, %c0_i32 : i32, i32
  }
  func.func @transform_1(%arg0: i32) -> (i32, i32) {
    %c0_i32 = arith.constant 0 : i32
    %c0_i32_0 = arith.constant 0 : i32
    return %arg0, %c0_i32 : i32, i32
  }
}

</mosaic_0001>

<bundles_post_ra>
// kernel: tpu_custom_call.1
= control target key start
LH: loop header
LB: loop body
LE: loop exit
PB: predicated region body
PF: predicated region fallthrough
CT: control target
= control target key end

     0   :  { %6 = vsyncpa [#allocation3], 0  ;;  %s144_s0 = inlined_call_operand.hbm [shape: f32[32,128], index: 0, kind: input, shape index: {}]   ;;  %s145_s1 = inlined_call_operand.hbm [shape: f32[32,128], index: 1, kind: output, shape index: {}]  }
   0x1   :  { %7 = vsyncpa [#allocation4], 0  ;;  %s100_s6 = smov [#allocation2]   ;;  %s52_s10 = scalar_lea.hbm %s144_s0, 512 }
   0x2   :  { %s13_s7 = sshll.u32 %s100_s6, 4  ;;  %p53_p0 = scmp.ne.s32.totalorder %s144_s0, %s52_s10  ;;  %s14_s7 = int_to_ptr.vmem [resolvable:$true] %s13_s7 }
   0x3   :  { %p56_p1 = scmp.lt.u32.totalorder %s52_s10, %s144_s0 }
   0x5   :  { %p58_p2 = pnand %p56_p1, %p53_p0 }
   0x7   :  { %61 = shalt.err (!%p58_p2)
}
   0x8   :  { %s62_s15 = scalar_lea.vmem %s14_s7, 512  ;;  %p67_p4 = scmp.lt.s32.totalorder %s14_s7, %s14_s7 }
   0x9   :  { %p63_p3 = scmp.ne.s32.totalorder %s14_s7, %s62_s15  ;;  %p68_p5 = scmp.lt.s32.totalorder %s62_s15, %s62_s15 }
   0xb   :  { %p69_p6 = por %p68_p5, %p67_p4 }
   0xd   :  { %p70_p7 = pnand %p69_p6, %p63_p3 }
   0xf   :  { %73 = shalt.err (!%p70_p7)
}
  0x10   :  { %s101_s16 = smov 128   ;;  %s102_s17 = smov 8  }
  0x11   :  { %19 = dma.hbm_to_vmem [thread:$0]  %s144_s0, 512, %s14_s7, [#allocation3], %s101_s16, %s101_s16, %s102_s17  }
  0x12   :  { %96 = dma.done.wait [#allocation3], 512  }
  0x13   :  { %97 = vsyncadd [#allocation3], 4294966784  ;;  %s103_s20 = smov [#allocation5]   ;;  %v23_v0 = vld [vmem:[#allocation2] sm:$0xff]  ;;  %v24_v1 = vld [vmem:[#allocation2 + $0x8] sm:$0xff] }
  0x14   :  { %s36_s21 = sshll.u32 %s103_s20, 4  ;;  %v25_v2 = vld [vmem:[#allocation2 + $0x10] sm:$0xff]  ;;  %27 = vst [vmem:[#allocation5] sm:$0xff] %v23_v0  ;;  %28 = vst [vmem:[#allocation5 + $0x8] sm:$0xff] %v24_v1  ;;  %v26_v3 = vld [vmem:[#allocation2 + $0x18] sm:$0xff]  ;;  %s37_s21 = int_to_ptr.vmem [resolvable:$true] %s36_s21 }
  0x15   :  { %29 = vst [vmem:[#allocation5 + $0x10] sm:$0xff] %v25_v2  ;;  %30 = vst [vmem:[#allocation5 + $0x18] sm:$0xff] %v26_v3  ;;  %s74_s22 = scalar_lea.vmem %s37_s21, 512  ;;  %p79_p9 = scmp.lt.s32.totalorder %s37_s21, %s37_s21 }
  0x16   :  { %p75_p8 = scmp.ne.s32.totalorder %s37_s21, %s74_s22  ;;  %p80_p10 = scmp.lt.s32.totalorder %s74_s22, %s74_s22 }
  0x18   :  { %p81_p11 = por %p80_p10, %p79_p9 }
  0x1a   :  { %p82_p12 = pnand %p81_p11, %p75_p8 }
  0x1c   :  { %85 = shalt.err (!%p82_p12)
}
  0x1d   :  { %s86_s24 = scalar_lea.hbm %s145_s1, 512 }
  0x1e   :  { %p87_p13 = scmp.ne.s32.totalorder %s145_s1, %s86_s24  ;;  %p90_p0 = scmp.lt.u32.totalorder %s86_s24, %s145_s1 }
  0x20   :  { %p92_p1 = pnand %p90_p0, %p87_p13 }
  0x22   :  { %95 = shalt.err (!%p92_p1)
}
  0x23   :  { %42 = dma.vmem_to_hbm [thread:$0]  %s37_s21, 512, %s145_s1, [#allocation4], %s101_s16, %s101_s16, %s102_s17  }
  0x24   :  { %98 = dma.done.wait [#allocation4], 512  }
  0x25   :  { %99 = vsyncadd [#allocation4], 4294966784 }
  0x26   :  { %46 = vsyncpa [#allocation3], 1 }
  0x27   :  { %47 = vsyncpa [#allocation4], 1 }

</bundles_post_ra>
